<compile_context>
chip_gen: v7x
topology: tpu7x:2x2x1
jax: 0.10.0
libtpu: 0.0.40
codegen_flags: <defaults>
</compile_context>

<pallas_src>
import functools

import jax
import jax.numpy as jnp
from jax import lax
from jax.experimental import pallas as pl
from jax.experimental.pallas import tpu as pltpu


def temporal_block_kernel(x_ref, w1_ref, b1_ref, w2_ref, b2_ref, wd_ref, bd_ref,
                          o_ref, *, K, dil, pad, L, BT, Cin, Cout, cdt):
    """Fused TemporalBlock forward for one batch tile (BT elements on lanes).

    x_ref : (Cin, BT*L)       input tile, compute dtype (batch folded on lanes)
    w1_ref: (K, Cout, Cin)    conv1 weight, tap-major
    b1_ref: (Cout, 1)         conv1 bias (f32)
    w2_ref: (K, Cout, Cout)   conv2 weight, tap-major
    b2_ref: (Cout, 1)         conv2 bias (f32)
    wd_ref: (Cout, Cin)       1x1 downsample weight
    bd_ref: (Cout, 1)         downsample bias (f32)
    o_ref : (Cout, BT*L)      output tile
    """
    lanes = BT * L
    x = x_ref[...]                                        # (Cin, lanes)

    # Position of every lane column within its batch segment (t = col % L).
    # Built once; reused for every tap's zero-padding halo mask.
    t_idx = lax.broadcasted_iota(jnp.int32, (1, lanes), 1) % L

    # Static per-tap shifts and halo masks (shared by conv1 and conv2).
    shifts, masks = [], []
    for k in range(K):
        s = k * dil - pad                                  # static column shift
        shifts.append(s)
        if s == 0:
            masks.append(None)
        else:
            lo, hi = max(0, -s), min(L, L - s)             # valid t range of tap k
            masks.append((t_idx >= lo) & (t_idx < hi))

    def dilated_conv(inp, w_ref):
        """sum_k W_k @ shift_k(inp), zero-padded, all in registers (f32 acc)."""
        acc = None
        for k in range(K):
            s = shifts[k]
            if s == 0:
                op = inp
            else:
                # roll puts inp[:, p + s] at column p; wrap-around columns fall
                # exactly on the masked halo positions (|s| <= pad < L).
                rolled = pltpu.roll(inp, shift=(-s) % lanes, axis=1)
                op = jnp.where(masks[k], rolled, jnp.zeros_like(rolled))
            part = jnp.dot(w_ref[k], op, preferred_element_type=jnp.float32)
            acc = part if acc is None else acc + part
        return acc                                         # (Cout, lanes) f32

    # ---- conv1 + bias + ReLU -----------------------------------------------
    h1 = jnp.maximum(dilated_conv(x, w1_ref) + b1_ref[...], 0.0)
    # dropout1: identity (eval-mode semantics)
    # TODO(synk): training-mode dropout (pltpu.prng_seed + stateful_bernoulli)
    # is not implemented; eval-mode is an identity.
    h1c = h1.astype(cdt)                                   # single cast for bf16 path

    # ---- conv2 + bias + ReLU -----------------------------------------------
    h2 = jnp.maximum(dilated_conv(h1c, w2_ref) + b2_ref[...], 0.0)
    # dropout2: identity (eval-mode semantics)

    # ---- residual: 1x1 conv downsample, add, final ReLU ---------------------
    res = (jnp.dot(wd_ref[...], x, preferred_element_type=jnp.float32)
           + bd_ref[...])
    o_ref[...] = jnp.maximum(h2 + res, 0.0).astype(o_ref.dtype)


def _estimate_vmem_bytes(bt, L, Cin, Cout, K, cdt_bytes):
    """Rough per-grid-step VMEM working set (bytes) for batch tile `bt`."""
    lanes = bt * L
    io = 2 * (Cin * cdt_bytes + Cout * 4) * lanes          # double-buffered x/out tiles
    live = (2 * Cin * cdt_bytes                            # x + rolled operand
            + Cout * cdt_bytes                             # h1 in compute dtype
            + 3 * Cout * 4) * lanes                        # h1/h2/acc/res f32 live values
    wts = (K * Cout * Cin + K * Cout * Cout + Cout * Cin) * cdt_bytes + 3 * Cout * 4
    return io + live + wts


def _pick_batch_tile(N, L, Cin, Cout, K, cdt_bytes, budget_bytes):
    """Largest divisor of N that fits the VMEM budget, preferring BT*L % 128 == 0."""
    divisors = [d for d in range(1, N + 1) if N % d == 0]
    fitting = [d for d in divisors
               if _estimate_vmem_bytes(d, L, Cin, Cout, K, cdt_bytes) <= budget_bytes
               and d * L <= 8192]
    if not fitting:
        fitting = [1]
    aligned = [d for d in fitting if (d * L) % 128 == 0]
    return max(aligned) if aligned else max(fitting)


def temporal_block(x, w1, b1, w2, b2, wd, bd, *, kernel_size, dilation, padding,
                   stride=1, batch_tile=None, compute_dtype=None,
                   out_dtype=jnp.float32, vmem_budget_bytes=44 << 20):
    """x: (N, Cin, L). Weights in PyTorch layout: w* (Cout, Cin, K), b* (Cout,).

    compute_dtype: matmul-operand dtype (jnp.bfloat16 recommended on v6e/v7x);
    accumulation, bias add, ReLU and the residual add stay f32.
    """
    N, Cin, L = x.shape
    Cout = w1.shape[0]
    K = kernel_size
    if stride != 1 or 2 * padding != dilation * (K - 1):
        raise ValueError("residual add requires L_out == L: stride=1 and "
                         "padding == dilation*(kernel_size-1)/2")
    if padding >= L:
        raise ValueError("padding must be < L")
    cdt = jnp.dtype(compute_dtype) if compute_dtype is not None else jnp.dtype(x.dtype)
    cdt_bytes = cdt.itemsize

    if batch_tile is None:
        # Size BT against the VMEM budget (v7x-safe default 44 MiB); on v7x a
        # grid of G >= 2 additionally lets the two TensorCores share the work.
        batch_tile = _pick_batch_tile(N, L, Cin, Cout, K, cdt_bytes, vmem_budget_bytes)
    BT = batch_tile
    assert N % BT == 0
    G = N // BT

    # ---- wrapper-side layout plumbing (cheap XLA reshape/transpose) --------
    # x: (N, Cin, L) -> (G, Cin, BT*L): channels on sublanes, batch*time on lanes.
    xk = (x.reshape(G, BT, Cin, L).transpose(0, 2, 1, 3)
           .reshape(G, Cin, BT * L).astype(cdt))
    # conv weights: (Cout, Cin, K) -> (K, Cout, Cin), tap-major.
    w1k = jnp.transpose(w1, (2, 0, 1)).astype(cdt)
    w2k = jnp.transpose(w2, (2, 0, 1)).astype(cdt)
    if wd is None:                                   # n_inputs == n_outputs case
        wdk = jnp.eye(Cout, dtype=cdt)
        bdk = jnp.zeros((Cout, 1), jnp.float32)
    else:
        wdk = wd[:, :, 0].astype(cdt)
        bdk = bd.reshape(Cout, 1).astype(jnp.float32)
    b1k = b1.reshape(Cout, 1).astype(jnp.float32)
    b2k = b2.reshape(Cout, 1).astype(jnp.float32)

    kernel = functools.partial(temporal_block_kernel, K=K, dil=dilation,
                               pad=padding, L=L, BT=BT, Cin=Cin, Cout=Cout, cdt=cdt)

    vmem_limit = int(min(100 << 20,
                         max(32 << 20,
                             2 * _estimate_vmem_bytes(BT, L, Cin, Cout, K, cdt_bytes))))

    out = pl.pallas_call(
        kernel,
        out_shape=jax.ShapeDtypeStruct((G, Cout, BT * L), out_dtype),
        grid_spec=pltpu.PrefetchScalarGridSpec(
            num_scalar_prefetch=0,
            grid=(G,),
            in_specs=[
                pl.BlockSpec((None, Cin, BT * L), lambda g: (g, 0, 0)),   # x tile
                pl.BlockSpec((K, Cout, Cin), lambda g: (0, 0, 0)),        # W1 (tap-major)
                pl.BlockSpec((Cout, 1), lambda g: (0, 0)),                # b1
                pl.BlockSpec((K, Cout, Cout), lambda g: (0, 0, 0)),       # W2 (tap-major)
                pl.BlockSpec((Cout, 1), lambda g: (0, 0)),                # b2
                pl.BlockSpec((Cout, Cin), lambda g: (0, 0)),              # Wd (1x1)
                pl.BlockSpec((Cout, 1), lambda g: (0, 0)),                # bd
            ],
            out_specs=pl.BlockSpec((None, Cout, BT * L), lambda g: (g, 0, 0)),
        ),
        compiler_params=pltpu.CompilerParams(
            dimension_semantics=("parallel",),
            vmem_limit_bytes=vmem_limit),
    )(xk, w1k, b1k, w2k, b2k, wdk, bdk)

    # (G, Cout, BT*L) -> (N, Cout, L)
    return (out.reshape(G, Cout, BT, L).transpose(0, 2, 1, 3)
               .reshape(N, Cout, L))


# ---------------------------- pure-JAX reference ----------------------------
def conv1d_ref(x, w, b, dilation, padding):
    out = lax.conv_general_dilated(
        x, w, window_strides=(1,), padding=[(padding, padding)],
        rhs_dilation=(dilation,), dimension_numbers=("NCH", "OIH", "NCH"),
        precision=lax.Precision.HIGHEST)
    return out + b[None, :, None]


def temporal_block_ref(x, w1, b1, w2, b2, wd, bd, *, dilation, padding):
    h1 = jnp.maximum(conv1d_ref(x, w1, b1, dilation, padding), 0.0)
    h2 = jnp.maximum(conv1d_ref(h1, w2, b2, dilation, padding), 0.0)
    res = conv1d_ref(x, wd, bd, 1, 0)
    return jnp.maximum(h2 + res, 0.0)


if __name__ == "__main__":
    # Small config: n_inputs=4, n_outputs=8, kernel_size=3, stride=1,
    # dilation=1, padding=1 (so L_out == L and the residual add is valid).
    N, Cin, Cout, L = 2, 4, 8, 16
    K, dilation, padding = 3, 1, 1

    key = jax.random.PRNGKey(0)
    ks = jax.random.split(key, 7)

    def uinit(k, shape, fan_in):
        bound = float(1.0 / (fan_in ** 0.5))   # PyTorch default Conv1d init range
        return jax.random.uniform(k, shape, jnp.float32, -bound, bound)

    x = jax.random.normal(ks[0], (N, Cin, L), jnp.float32)
    w1 = uinit(ks[1], (Cout, Cin, K), Cin * K)
    b1 = uinit(ks[2], (Cout,), Cin * K)
    w2 = uinit(ks[3], (Cout, Cout, K), Cout * K)
    b2 = uinit(ks[4], (Cout,), Cout * K)
    wd = uinit(ks[5], (Cout, Cin, 1), Cin)      # downsample exists since Cin != Cout
    bd = uinit(ks[6], (Cout,), Cin)

    ref = temporal_block_ref(x, w1, b1, w2, b2, wd, bd,
                             dilation=dilation, padding=padding)

    # f32 compute path
    out = temporal_block(x, w1, b1, w2, b2, wd, bd,
                         kernel_size=K, dilation=dilation, padding=padding)
    out = jax.block_until_ready(out)
    assert out.shape == (N, Cout, L)
    assert jnp.allclose(out, ref, atol=1e-3, rtol=1e-3), "f32 mismatch vs reference"

    # bf16 compute path (recommended on v6e/v7x: full-rate MXU, half the input
    # DMA bytes); accumulation / elementwise work stays f32 inside the kernel.
    # Note: the residual 1x1 conv also runs with bf16 operands in this path
    # (PyTorch computes it in f32), acceptable at the stated tolerance.
    out_bf16 = jax.block_until_ready(
        temporal_block(x, w1, b1, w2, b2, wd, bd, kernel_size=K,
                       dilation=dilation, padding=padding,
                       compute_dtype=jnp.bfloat16))
    assert jnp.allclose(out_bf16, ref, atol=5e-2, rtol=5e-2), "bf16 mismatch vs reference"

    print("KERNEL_OK")
</pallas_src>

<mosaic_0001>
module attributes {stable_mosaic.version = 11 : i64} {
  func.func @temporal_block_kernel(%arg0: i32, %arg1: memref<1x4x32xf32, #tpu.memory_space<vmem>>, %arg2: memref<3x8x4xf32, #tpu.memory_space<vmem>>, %arg3: memref<8x1xf32, #tpu.memory_space<vmem>>, %arg4: memref<3x8x8xf32, #tpu.memory_space<vmem>>, %arg5: memref<8x1xf32, #tpu.memory_space<vmem>>, %arg6: memref<8x4xf32, #tpu.memory_space<vmem>>, %arg7: memref<8x1xf32, #tpu.memory_space<vmem>>, %arg8: memref<1x8x32xf32, #tpu.memory_space<vmem>>) attributes {dimension_semantics = [#tpu.dimension_semantics<parallel>], iteration_bounds = array<i64: 1>, scalar_prefetch = 0 : i64, scratch_operands = 0 : i64, tpu.core_type = #tpu.core_type<tc>, window_params = [{transform_indices = @transform_0, window_bounds = array<i64: 1, 4, 32>}, {pipeline_mode = #tpu.pipeline_mode<synchronous>, transform_indices = @transform_1, window_bounds = array<i64: 3, 8, 4>}, {pipeline_mode = #tpu.pipeline_mode<synchronous>, transform_indices = @transform_2, window_bounds = array<i64: 8, 1>}, {pipeline_mode = #tpu.pipeline_mode<synchronous>, transform_indices = @transform_3, window_bounds = array<i64: 3, 8, 8>}, {pipeline_mode = #tpu.pipeline_mode<synchronous>, transform_indices = @transform_4, window_bounds = array<i64: 8, 1>}, {pipeline_mode = #tpu.pipeline_mode<synchronous>, transform_indices = @transform_5, window_bounds = array<i64: 8, 4>}, {pipeline_mode = #tpu.pipeline_mode<synchronous>, transform_indices = @transform_6, window_bounds = array<i64: 8, 1>}, {transform_indices = @transform_7, window_bounds = array<i64: 1, 8, 32>}]} {
    %c0 = arith.constant 0 : index
    %c0_0 = arith.constant 0 : index
    %c0_1 = arith.constant 0 : index
    %0 = vector.load %arg1[%c0, %c0_0, %c0_1] : memref<1x4x32xf32, #tpu.memory_space<vmem>>, vector<1x4x32xf32>
    %1 = vector.shape_cast %0 : vector<1x4x32xf32> to vector<4x32xf32>
    %2 = tpu.iota {dimensions = array<i32: 1>} : vector<1x32xi32>
    %c16_i32 = arith.constant 16 : i32
    %c0_i32 = arith.constant 0 : i32
    %3 = arith.cmpi eq, %c16_i32, %c0_i32 : i32
    %c1_i32 = arith.constant 1 : i32
    %4 = arith.select %3, %c1_i32, %c16_i32 : i32
    %5 = vector.broadcast %4 : i32 to vector<1x32xi32>
    %6 = arith.remsi %2, %5 : vector<1x32xi32>
    %c0_i32_2 = arith.constant 0 : i32
    %7 = vector.broadcast %c0_i32_2 : i32 to vector<1x32xi32>
    %8 = arith.cmpi ne, %6, %7 : vector<1x32xi32>
    %c0_i32_3 = arith.constant 0 : i32
    %9 = vector.broadcast %c0_i32_3 : i32 to vector<1x32xi32>
    %10 = arith.cmpi slt, %6, %9 : vector<1x32xi32>
    %c0_i32_4 = arith.constant 0 : i32
    %11 = arith.cmpi slt, %4, %c0_i32_4 : i32
    %12 = vector.broadcast %11 : i1 to vector<1x32xi1>
    %13 = vector.broadcast %12 : vector<1x32xi1> to vector<1x32xi1>
    %14 = arith.xori %10, %13 : vector<1x32xi1>
    %15 = arith.andi %14, %8 : vector<1x32xi1>
    %16 = vector.broadcast %4 : i32 to vector<1x32xi32>
    %17 = arith.addi %6, %16 : vector<1x32xi32>
    %18 = arith.select %15, %17, %6 : vector<1x32xi1>, vector<1x32xi32>
    %c1_i32_5 = arith.constant 1 : i32
    %19 = vector.broadcast %c1_i32_5 : i32 to vector<1x32xi32>
    %20 = arith.cmpi sge, %18, %19 : vector<1x32xi32>
    %c16_i32_6 = arith.constant 16 : i32
    %21 = vector.broadcast %c16_i32_6 : i32 to vector<1x32xi32>
    %22 = arith.cmpi slt, %18, %21 : vector<1x32xi32>
    %23 = arith.andi %20, %22 : vector<1x32xi1>
    %c0_i32_7 = arith.constant 0 : i32
    %24 = vector.broadcast %c0_i32_7 : i32 to vector<1x32xi32>
    %25 = arith.cmpi sge, %18, %24 : vector<1x32xi32>
    %c15_i32 = arith.constant 15 : i32
    %26 = vector.broadcast %c15_i32 : i32 to vector<1x32xi32>
    %27 = arith.cmpi slt, %18, %26 : vector<1x32xi32>
    %28 = arith.andi %25, %27 : vector<1x32xi1>
    %c1_i32_8 = arith.constant 1 : i32
    %29 = tpu.dynamic_rotate %1 by %c1_i32_8 dim 1 : vector<4x32xf32>, i32 -> vector<4x32xf32>
    %cst = arith.constant 0.000000e+00 : f32
    %30 = vector.broadcast %cst : f32 to vector<4x32xf32>
    %31 = vector.shape_cast %23 : vector<1x32xi1> to vector<1x32xi1>
    %32 = vector.broadcast %31 : vector<1x32xi1> to vector<4x32xi1>
    %33 = arith.select %32, %29, %30 : vector<4x32xi1>, vector<4x32xf32>
    %c0_9 = arith.constant 0 : index
    %c0_10 = arith.constant 0 : index
    %c0_11 = arith.constant 0 : index
    %34 = vector.load %arg2[%c0_9, %c0_10, %c0_11] : memref<3x8x4xf32, #tpu.memory_space<vmem>>, vector<1x8x4xf32>
    %35 = vector.shape_cast %34 : vector<1x8x4xf32> to vector<8x4xf32>
    %cst_12 = arith.constant dense<0.000000e+00> : vector<8x32xf32>
    %36 = tpu.matmul %35, %33, %cst_12 {dimension_numbers = #tpu.dot_dimension_numbers<[1], [0], [0], [1], [0, 0, 1, 1], [], []>} : vector<8x4xf32>, vector<4x32xf32>, vector<8x32xf32> -> vector<8x32xf32>
    %c1 = arith.constant 1 : index
    %c0_13 = arith.constant 0 : index
    %c0_14 = arith.constant 0 : index
    %37 = vector.load %arg2[%c1, %c0_13, %c0_14] : memref<3x8x4xf32, #tpu.memory_space<vmem>>, vector<1x8x4xf32>
    %38 = vector.shape_cast %37 : vector<1x8x4xf32> to vector<8x4xf32>
    %cst_15 = arith.constant dense<0.000000e+00> : vector<8x32xf32>
    %39 = tpu.matmul %38, %1, %cst_15 {dimension_numbers = #tpu.dot_dimension_numbers<[1], [0], [0], [1], [0, 0, 1, 1], [], []>} : vector<8x4xf32>, vector<4x32xf32>, vector<8x32xf32> -> vector<8x32xf32>
    %40 = arith.addf %36, %39 : vector<8x32xf32>
    %c31_i32 = arith.constant 31 : i32
    %41 = tpu.dynamic_rotate %1 by %c31_i32 dim 1 : vector<4x32xf32>, i32 -> vector<4x32xf32>
    %cst_16 = arith.constant 0.000000e+00 : f32
    %42 = vector.broadcast %cst_16 : f32 to vector<4x32xf32>
    %43 = vector.shape_cast %28 : vector<1x32xi1> to vector<1x32xi1>
    %44 = vector.broadcast %43 : vector<1x32xi1> to vector<4x32xi1>
    %45 = arith.select %44, %41, %42 : vector<4x32xi1>, vector<4x32xf32>
    %c2 = arith.constant 2 : index
    %c0_17 = arith.constant 0 : index
    %c0_18 = arith.constant 0 : index
    %46 = vector.load %arg2[%c2, %c0_17, %c0_18] : memref<3x8x4xf32, #tpu.memory_space<vmem>>, vector<1x8x4xf32>
    %47 = vector.shape_cast %46 : vector<1x8x4xf32> to vector<8x4xf32>
    %cst_19 = arith.constant dense<0.000000e+00> : vector<8x32xf32>
    %48 = tpu.matmul %47, %45, %cst_19 {dimension_numbers = #tpu.dot_dimension_numbers<[1], [0], [0], [1], [0, 0, 1, 1], [], []>} : vector<8x4xf32>, vector<4x32xf32>, vector<8x32xf32> -> vector<8x32xf32>
    %49 = arith.addf %40, %48 : vector<8x32xf32>
    %c0_20 = arith.constant 0 : index
    %c0_21 = arith.constant 0 : index
    %50 = vector.load %arg3[%c0_20, %c0_21] : memref<8x1xf32, #tpu.memory_space<vmem>>, vector<8x1xf32>
    %51 = vector.broadcast %50 : vector<8x1xf32> to vector<8x32xf32>
    %52 = arith.addf %49, %51 : vector<8x32xf32>
    %cst_22 = arith.constant 0.000000e+00 : f32
    %53 = vector.broadcast %cst_22 : f32 to vector<8x32xf32>
    %54 = arith.maximumf %52, %53 : vector<8x32xf32>
    %c1_i32_23 = arith.constant 1 : i32
    %55 = tpu.dynamic_rotate %54 by %c1_i32_23 dim 1 : vector<8x32xf32>, i32 -> vector<8x32xf32>
    %cst_24 = arith.constant 0.000000e+00 : f32
    %56 = vector.broadcast %cst_24 : f32 to vector<8x32xf32>
    %57 = vector.shape_cast %23 : vector<1x32xi1> to vector<1x32xi1>
    %58 = vector.broadcast %57 : vector<1x32xi1> to vector<8x32xi1>
    %59 = arith.select %58, %55, %56 : vector<8x32xi1>, vector<8x32xf32>
    %c0_25 = arith.constant 0 : index
    %c0_26 = arith.constant 0 : index
    %c0_27 = arith.constant 0 : index
    %60 = vector.load %arg4[%c0_25, %c0_26, %c0_27] : memref<3x8x8xf32, #tpu.memory_space<vmem>>, vector<1x8x8xf32>
    %61 = vector.shape_cast %60 : vector<1x8x8xf32> to vector<8x8xf32>
    %cst_28 = arith.constant dense<0.000000e+00> : vector<8x32xf32>
    %62 = tpu.matmul %61, %59, %cst_28 {dimension_numbers = #tpu.dot_dimension_numbers<[1], [0], [0], [1], [0, 0, 1, 1], [], []>} : vector<8x8xf32>, vector<8x32xf32>, vector<8x32xf32> -> vector<8x32xf32>
    %c1_29 = arith.constant 1 : index
    %c0_30 = arith.constant 0 : index
    %c0_31 = arith.constant 0 : index
    %63 = vector.load %arg4[%c1_29, %c0_30, %c0_31] : memref<3x8x8xf32, #tpu.memory_space<vmem>>, vector<1x8x8xf32>
    %64 = vector.shape_cast %63 : vector<1x8x8xf32> to vector<8x8xf32>
    %cst_32 = arith.constant dense<0.000000e+00> : vector<8x32xf32>
    %65 = tpu.matmul %64, %54, %cst_32 {dimension_numbers = #tpu.dot_dimension_numbers<[1], [0], [0], [1], [0, 0, 1, 1], [], []>} : vector<8x8xf32>, vector<8x32xf32>, vector<8x32xf32> -> vector<8x32xf32>
    %66 = arith.addf %62, %65 : vector<8x32xf32>
    %c31_i32_33 = arith.constant 31 : i32
    %67 = tpu.dynamic_rotate %54 by %c31_i32_33 dim 1 : vector<8x32xf32>, i32 -> vector<8x32xf32>
    %cst_34 = arith.constant 0.000000e+00 : f32
    %68 = vector.broadcast %cst_34 : f32 to vector<8x32xf32>
    %69 = vector.shape_cast %28 : vector<1x32xi1> to vector<1x32xi1>
    %70 = vector.broadcast %69 : vector<1x32xi1> to vector<8x32xi1>
    %71 = arith.select %70, %67, %68 : vector<8x32xi1>, vector<8x32xf32>
    %c2_35 = arith.constant 2 : index
    %c0_36 = arith.constant 0 : index
    %c0_37 = arith.constant 0 : index
    %72 = vector.load %arg4[%c2_35, %c0_36, %c0_37] : memref<3x8x8xf32, #tpu.memory_space<vmem>>, vector<1x8x8xf32>
    %73 = vector.shape_cast %72 : vector<1x8x8xf32> to vector<8x8xf32>
    %cst_38 = arith.constant dense<0.000000e+00> : vector<8x32xf32>
    %74 = tpu.matmul %73, %71, %cst_38 {dimension_numbers = #tpu.dot_dimension_numbers<[1], [0], [0], [1], [0, 0, 1, 1], [], []>} : vector<8x8xf32>, vector<8x32xf32>, vector<8x32xf32> -> vector<8x32xf32>
    %75 = arith.addf %66, %74 : vector<8x32xf32>
    %c0_39 = arith.constant 0 : index
    %c0_40 = arith.constant 0 : index
    %76 = vector.load %arg5[%c0_39, %c0_40] : memref<8x1xf32, #tpu.memory_space<vmem>>, vector<8x1xf32>
    %77 = vector.broadcast %76 : vector<8x1xf32> to vector<8x32xf32>
    %78 = arith.addf %75, %77 : vector<8x32xf32>
    %cst_41 = arith.constant 0.000000e+00 : f32
    %79 = vector.broadcast %cst_41 : f32 to vector<8x32xf32>
    %80 = arith.maximumf %78, %79 : vector<8x32xf32>
    %c0_42 = arith.constant 0 : index
    %c0_43 = arith.constant 0 : index
    %81 = vector.load %arg6[%c0_42, %c0_43] : memref<8x4xf32, #tpu.memory_space<vmem>>, vector<8x4xf32>
    %cst_44 = arith.constant dense<0.000000e+00> : vector<8x32xf32>
    %82 = tpu.matmul %81, %1, %cst_44 {dimension_numbers = #tpu.dot_dimension_numbers<[1], [0], [0], [1], [0, 0, 1, 1], [], []>} : vector<8x4xf32>, vector<4x32xf32>, vector<8x32xf32> -> vector<8x32xf32>
    %c0_45 = arith.constant 0 : index
    %c0_46 = arith.constant 0 : index
    %83 = vector.load %arg7[%c0_45, %c0_46] : memref<8x1xf32, #tpu.memory_space<vmem>>, vector<8x1xf32>
    %84 = vector.broadcast %83 : vector<8x1xf32> to vector<8x32xf32>
    %85 = arith.addf %82, %84 : vector<8x32xf32>
    %86 = arith.addf %80, %85 : vector<8x32xf32>
    %cst_47 = arith.constant 0.000000e+00 : f32
    %87 = vector.broadcast %cst_47 : f32 to vector<8x32xf32>
    %88 = arith.maximumf %86, %87 : vector<8x32xf32>
    %c0_48 = arith.constant 0 : index
    %c0_49 = arith.constant 0 : index
    %c0_50 = arith.constant 0 : index
    %89 = vector.load %arg8[%c0_48, %c0_49, %c0_50] : memref<1x8x32xf32, #tpu.memory_space<vmem>>, vector<1x8x32xf32>
    %90 = vector.shape_cast %89 : vector<1x8x32xf32> to vector<8x32xf32>
    %91 = vector.shape_cast %88 : vector<8x32xf32> to vector<1x8x32xf32>
    tpu.vector_store %arg8[%c0_48, %c0_49, %c0_50], %91 {strides = array<i32>} : memref<1x8x32xf32, #tpu.memory_space<vmem>>, vector<1x8x32xf32>,
    return
  }
  func.func @transform_0(%arg0: i32) -> (i32, i32, i32) {
    %c0_i32 = arith.constant 0 : i32
    %c0_i32_0 = arith.constant 0 : i32
    %c0_i32_1 = arith.constant 0 : i32
    return %arg0, %c0_i32, %c0_i32_0 : i32, i32, i32
  }
  func.func @transform_1(%arg0: i32) -> (i32, i32, i32) {
    %c0_i32 = arith.constant 0 : i32
    %c0_i32_0 = arith.constant 0 : i32
    %c0_i32_1 = arith.constant 0 : i32
    %c0_i32_2 = arith.constant 0 : i32
    return %c0_i32, %c0_i32_0, %c0_i32_1 : i32, i32, i32
  }
  func.func @transform_2(%arg0: i32) -> (i32, i32) {
    %c0_i32 = arith.constant 0 : i32
    %c0_i32_0 = arith.constant 0 : i32
    %c0_i32_1 = arith.constant 0 : i32
    return %c0_i32, %c0_i32_0 : i32, i32
  }
  func.func @transform_3(%arg0: i32) -> (i32, i32, i32) {
    %c0_i32 = arith.constant 0 : i32
    %c0_i32_0 = arith.constant 0 : i32
    %c0_i32_1 = arith.constant 0 : i32
    %c0_i32_2 = arith.constant 0 : i32
    return %c0_i32, %c0_i32_0, %c0_i32_1 : i32, i32, i32
  }
  func.func @transform_4(%arg0: i32) -> (i32, i32) {
    %c0_i32 = arith.constant 0 : i32
    %c0_i32_0 = arith.constant 0 : i32
    %c0_i32_1 = arith.constant 0 : i32
    return %c0_i32, %c0_i32_0 : i32, i32
  }
  func.func @transform_5(%arg0: i32) -> (i32, i32) {
    %c0_i32 = arith.constant 0 : i32
    %c0_i32_0 = arith.constant 0 : i32
    %c0_i32_1 = arith.constant 0 : i32
    return %c0_i32, %c0_i32_0 : i32, i32
  }
  func.func @transform_6(%arg0: i32) -> (i32, i32) {
    %c0_i32 = arith.constant 0 : i32
    %c0_i32_0 = arith.constant 0 : i32
    %c0_i32_1 = arith.constant 0 : i32
    return %c0_i32, %c0_i32_0 : i32, i32
  }
  func.func @transform_7(%arg0: i32) -> (i32, i32, i32) {
    %c0_i32 = arith.constant 0 : i32
    %c0_i32_0 = arith.constant 0 : i32
    %c0_i32_1 = arith.constant 0 : i32
    return %arg0, %c0_i32, %c0_i32_0 : i32, i32, i32
  }
}

</mosaic_0001>

<bundles_post_ra>
// kernel: tpu_custom_call.1
= control target key start
LH: loop header
LB: loop body
LE: loop exit
PB: predicated region body
PF: predicated region fallthrough
CT: control target
= control target key end

     0   :  { %s917_s0 = inlined_call_operand.vmem [shape: f32[1,4,32], index: 0, kind: input, shape index: {}]   ;;  %s918_s1 = inlined_call_operand.vmem [shape: f32[3,8,4], index: 1, kind: input, shape index: {}]   ;;  %s919_s2 = inlined_call_operand.vmem [shape: f32[8,1], index: 2, kind: input, shape index: {}]   ;;  %s920_s3 = inlined_call_operand.vmem [shape: f32[3,8,8], index: 3, kind: input, shape index: {}]   ;;  %s921_s4 = inlined_call_operand.vmem [shape: f32[8,1], index: 4, kind: input, shape index: {}]   ;;  %s922_s5 = inlined_call_operand.vmem [shape: f32[8,4], index: 5, kind: input, shape index: {}]   ;;  %s923_s6 = inlined_call_operand.vmem [shape: f32[8,1], index: 6, kind: input, shape index: {}]   ;;  %s924_s7 = inlined_call_operand.hbm [shape: f32[1,8,32], index: 7, kind: output, shape index: {}]  }
   0x1   :  { %v808_v0 = vld [vmem:[%s917_s0] sm:$0xf] }
   0x2   :  { %12 = vsyncpa [#allocation3], 0  ;;  %s758_s26 = smov 32   ;;  %v759_v1 = vmov 0.0   ;;  %vm48_vm0 = vcmask 1047808   ;;  %vm69_vm1 = vcmask 1043456   ;;  %v28_v9 = vlaneseq }
   0x3   :  { %49 = vrot.lane.b32.xlu0 %v808_v0, %s758_s26  ;;  %690 = vmatprep.subr.mxu0 %v759_v1  ;;  %vm760_vm2 = vmmov 0   ;;  %v659_v4 = vld [vmem:[%s918_s1 + $0x8] sm:$0xff]  ;;  %vm65_vm3 = vcmask 31744   ;;  %v304_v5 = vld [vmem:[%s919_s2] sm:$0xff]  ;;  %v761_v6 = vmov 0   ;;  %s762_s30 = smov 97  }
   0x4   :  { %695 = vmatprep.subr.mxu1 %v759_v1  ;;  %691 = vmatpush3.msk.msra.mxu0 %vm69_vm1, %v808_v0  ;;  %s763_s8 = smov 127   ;;  %v29_v10 = vand.u32 127, %v28_v9  ;;  %v62_v14 = vld [vmem:[%s918_s1] sm:$0xff]  ;;  %v664_v18 = vld [vmem:[%s918_s1 + $0x10] sm:$0xff]  ;;  %v667_v33 = vld [vmem:[%s920_s3 + $0x8] sm:$0xff]  ;;  %vm326_vm6 = vcmask 64512  }
   0x5   :  { %692 = vmatprep.mubr.msk.f32.mxu0 %vm760_vm2, %v759_v1  ;;  %697 = vmatprep.mubr.msk.f32.mxu1 %vm760_vm2, %v759_v1  ;;  %v553_v36 = vld [vmem:[%s921_s4] sm:$0xff]  ;;  %v671_v39 = vld [vmem:[%s920_s3 + $0x10] sm:$0xff]  ;;  %vm643_vm7 = vcmask 261120  }
   0x6   :  { %693 = vmatmul.mubr.msk.f32.vlgmr.msra.gmra.mrb[0].mxu0 %vm65_vm3, %v659_v4  ;;  %700 = vmatprep.subr.mxu0 %v759_v1  ;;  %v34_v11 = vand.u32 15, %v29_v10  ;;  %v562_v37 = vld [vmem:[%s923_s6] sm:$0xff] }
   0x7   :  { %702 = vmatprep.mubr.msk.f32.mxu0 %vm760_vm2, %v759_v1  ;;  %732 = vset.pattern.permute.xlu0 %v761_v6  ;;  %v323_v38 = vld [vmem:[%s920_s3] sm:$0xff]  ;;  %s764_s3 = smov [#allocation2]  }
   0x8   :  { %733 = vset.pattern.permute.xlu1 %v761_v6  ;;  %vm837_vm4 = vcmp.ge.s32.totalorder %v34_v11, 1  ;;  %vm847_vm5 = vcmp.lt.s32.totalorder %v34_v11, 15  ;;  %v561_v42 = vld [vmem:[%s922_s5] sm:$0xff]  ;;  %s651_s5 = sshll.u32 %s764_s3, 4  ;;  %s652_s5 = int_to_ptr.vmem [resolvable:$true] %s651_s5 }
   0x9   :  { %s734_s21 = scalar_lea.vmem %s652_s5, 128  ;;  %p739_p1 = scmp.lt.s32.totalorder %s652_s5, %s652_s5 }
   0xa   :  { %p735_p0 = scmp.ne.s32.totalorder %s652_s5, %s734_s21  ;;  %p740_p2 = scmp.lt.s32.totalorder %s734_s21, %s734_s21 }
   0xc   :  { %p741_p3 = por %p740_p2, %p739_p1 }
   0xe   :  { %p742_p4 = pnand %p741_p3, %p735_p0 }
  0x75   :  { %v50_v2 = vpop.permute.xlu0 %49 }
  0x76   :  { %v51_v3 = vsel %vm48_vm0, %v50_v2, %v808_v0 }
  0x77   :  { %52 = vrot.lane.b32.xlu0 %v51_v3, %s758_s26 }
  0x7b   :  { %307 = vperm.xlu0 %732, %v304_v5  }
  0xd9   :  { %v139_v20 = vpop.f32.mrb[0].mxu0 }
  0xda   :  { %v694_v21 = vpop.f32.mrb[1].mxu0 }
  0xe9   :  { %v53_v7 = vpop.permute.xlu0 %52 }
  0xea   :  { %v54_v8 = vsel %vm48_vm0, %v53_v7, %v808_v0 }
  0xeb   :  { %58 = vrot.lane.b32.xlu1 %v54_v8, %s762_s30 }
  0xef   :  { %221 = vrot.lane.b32.xlu1 %v54_v8, %s763_s8 }
  0xfa   :  { %v308_v26 = vpop.permute.xlu0 %307 }
 0x15d   :  { %v59_v13 = vpop.permute.xlu1 %58 }
 0x15e   :  { %v61_v15 = vsel %vm837_vm4, %v59_v13, 0.0 }
 0x15f   :  { %696 = vmatpush3.msk.msra.mxu1 %vm69_vm1, %v61_v15 }
 0x160   :  { %698 = vmatmul.mubr.msk.f32.vlgmr.msra.gmra.mrb[0].mxu1 %vm65_vm3, %v62_v14  ;;  %705 = vmatprep.subr.mxu1 %v759_v1 }
 0x161   :  { %v222_v17 = vpop.permute.xlu1 %221  ;;  %707 = vmatprep.mubr.msk.f32.mxu1 %vm760_vm2, %v759_v1 }
 0x162   :  { %v224_v19 = vsel %vm847_vm5, %v222_v17, 0.0 }
 0x163   :  { %701 = vmatpush3.msk.msra.mxu0 %vm69_vm1, %v224_v19 }
 0x164   :  { %703 = vmatmul.mubr.msk.f32.vlgmr.msra.gmra.mrb[2].mxu0 %vm65_vm3, %v664_v18  ;;  %710 = vmatprep.subr.mxu0 %v759_v1 }
 0x165   :  { %712 = vmatprep.mubr.msk.f32.mxu0 %vm760_vm2, %v759_v1 }
 0x233   :  { %v215_v22 = vpop.f32.mrb[0].mxu1 }
 0x234   :  { %v216_v23 = vadd.f32 %v215_v22, %v139_v20  ;;  %v699_v24 = vpop.f32.mrb[1].mxu1 }
 0x237   :  { %v299_v25 = vpop.f32.mrb[2].mxu0 }
 0x238   :  { %v303_v27 = vadd.f32 %v299_v25, %v216_v23  ;;  %v704_v28 = vpop.f32.mrb[3].mxu0 }
 0x23a   :  { %v310_v29 = vadd.f32 %v308_v26, %v303_v27 }
 0x23c   :  { %v311_v30 = vmax.f32 %v310_v29, 0.0 }
 0x23e   :  { %312 = vrot.lane.b32.xlu1 %v311_v30, %s758_s26  ;;  %706 = vmatpush3.msra.mxu1 %v311_v30 }
 0x23f   :  { %715 = vmatprep.subr.mxu1 %v759_v1  ;;  %708 = vmatmul.mubr.msk.f32.vlgmr.msra.gmra.mrb[2].mxu1 %vm326_vm6, %v667_v33 }
 0x240   :  { %717 = vmatprep.mubr.msk.f32.mxu1 %vm760_vm2, %v759_v1 }
 0x2b0   :  { %v313_v31 = vpop.permute.xlu1 %312 }
 0x2b1   :  { %v314_v32 = vsel %vm48_vm0, %v313_v31, %v311_v30 }
 0x2b2   :  { %315 = vrot.lane.b32.xlu1 %v314_v32, %s758_s26 }
 0x312   :  { %v396_v43 = vpop.f32.mrb[2].mxu1 }
 0x313   :  { %v709_v44 = vpop.f32.mrb[3].mxu1 }
 0x324   :  { %v316_v34 = vpop.permute.xlu1 %315 }
 0x325   :  { %v317_v35 = vsel %vm48_vm0, %v316_v34, %v311_v30 }
 0x326   :  { %473 = vrot.lane.b32.xlu1 %v317_v35, %s763_s8  ;;  %319 = vrot.lane.b32.xlu0 %v317_v35, %s762_s30 }
 0x32a   :  { %556 = vperm.xlu0 %732, %v553_v36   ;;  %565 = vperm.xlu1 %733, %v562_v37  }
 0x398   :  { %v474_v40 = vpop.permute.xlu1 %473  ;;  %v320_v41 = vpop.permute.xlu0 %319 }
 0x399   :  { %711 = vmatpush3.msk.msra.mxu0 %vm837_vm4, %v320_v41  ;;  %716 = vmatpush3.msk.msra.mxu1 %vm847_vm5, %v474_v40 }
 0x39a   :  { %713 = vmatmul.mubr.msk.f32.vlgmr.msra.gmra.mrb[4].mxu0 %vm326_vm6, %v323_v38  ;;  %718 = vmatmul.mubr.msk.f32.vlgmr.msra.gmra.mrb[4].mxu1 %vm326_vm6, %v671_v39 }
 0x39b   :  { %720 = vmatprep.subr.mxu0 %v759_v1  ;;  %722 = vmatprep.mubr.msk.f32.mxu0 %vm760_vm2, %v759_v1 }
 0x39c   :  { %721 = vmatpush3.msk.msra.mxu0 %vm69_vm1, %v808_v0 }
 0x39e   :  { %723 = vmatmul.mubr.msk.f32.vlgmr.msra.gmra.mrb[6].mxu0 %vm65_vm3, %v561_v42 }
 0x3a9   :  { %v566_v50 = vpop.permute.xlu1 %565  ;;  %v557_v52 = vpop.permute.xlu0 %556 }
 0x46d   :  { %v469_v45 = vpop.f32.mrb[4].mxu0  ;;  %v548_v46 = vpop.f32.mrb[4].mxu1 }
 0x46e   :  { %v470_v47 = vadd.f32 %v469_v45, %v396_v43  ;;  %v714_v48 = vpop.f32.mrb[5].mxu0  ;;  %v719_v49 = vpop.f32.mrb[5].mxu1 }
 0x470   :  { %v552_v51 = vadd.f32 %v548_v46, %v470_v47 }
 0x471   :  { %v637_v53 = vpop.f32.mrb[6].mxu0 }
 0x472   :  { %v559_v54 = vadd.f32 %v557_v52, %v552_v51  ;;  %v638_v55 = vadd.f32 %v637_v53, %v566_v50  ;;  %v724_v56 = vpop.f32.mrb[7].mxu0 }
 0x474   :  { %v560_v57 = vmax.f32 %v559_v54, 0.0 }
 0x476   :  { %v641_v58 = vadd.f32 %v638_v55, %v560_v57 }
 0x478   :  { %v642_v59 = vmax.f32 %v641_v58, 0.0 }
 0x47a   :  { %644 = vst.msk [vmem:[#allocation2] sm:$0xff] %vm643_vm7, %v642_v59 }
 0x47b   :  { %745 = shalt.err (!%p742_p4)
}
 0x47c   :  { %s746_s24 = scalar_lea.hbm %s924_s7, 128 }
 0x47d   :  { %p747_p5 = scmp.ne.s32.totalorder %s924_s7, %s746_s24  ;;  %p750_p6 = scmp.lt.u32.totalorder %s746_s24, %s924_s7 }
 0x47f   :  { %p752_p7 = pnand %p750_p6, %p747_p5 }
 0x481   :  { %755 = shalt.err (!%p752_p7)
}
 0x482   :  { %654 = dma.vmem_to_hbm [thread:$0]  %s652_s5, 128, %s924_s7, [#allocation3]  }
 0x483   :  { %756 = dma.done.wait [#allocation3], 128  }
 0x484   :  { %757 = vsyncadd [#allocation3], 4294967168 }
 0x485   :  { %658 = vsyncpa [#allocation3], 1 }

</bundles_post_ra>
